<compile_context>
chip_gen: v7x
topology: tpu7x:2x2x1
jax: 0.10.0
libtpu: 0.0.40
codegen_flags: <defaults>
</compile_context>

<pallas_src>
import functools

import jax
import jax.numpy as jnp
import numpy as np
from jax.experimental import pallas as pl
from jax.experimental.pallas import tpu as pltpu

NEG_SLOPE = 0.01  # nn.LeakyReLU(negative_slope=0.01)


def _leaky_relu(x):
    return jnp.where(x > 0, x, NEG_SLOPE * x)


def _round_up(n, m):
    return ((n + m - 1) // m) * m


# ---------------------------------------------------------------------------
# Fused Pallas kernel: full TCN_SLID forward for one batch element per grid step
# ---------------------------------------------------------------------------
def _tcn_slid_fused_kernel(*refs, kernel_size, block_dilations, block_has_down,
                           seq_len, margin, mm_dtype):
    x_ref = refs[0]
    o_ref = refs[-2]
    hbuf = refs[-1]                      # (C_MAXP, margin + T) f32 scratch
    w_refs = refs[1:-2]
    T = seq_len

    # Zero once per grid step: the left `margin` columns supply the causal zero
    # padding for every dilated conv in the network.
    hbuf[...] = jnp.zeros_like(hbuf)

    def causal_dilated_conv(h, w_ref, b_ref, dilation):
        """h: (cinp, T) channel-major (zero pad rows). All taps in ONE MXU matmul:
        (coutp, n_taps*cinp) @ (n_taps*cinp, T)."""
        cinp = h.shape[0]
        hbuf[pl.ds(0, cinp), pl.ds(margin, T)] = h
        pieces = []
        k_min = None
        for k in range(kernel_size):                    # static, fully unrolled
            shift = (kernel_size - 1 - k) * dilation    # causal left shift of tap k
            if shift >= T:                              # provably all-zero tap: skip
                continue
            if k_min is None:
                k_min = k
            # window == [0]*shift ++ h[:, :T-shift]   (zeros come from the margin)
            pieces.append(hbuf[pl.ds(0, cinp), pl.ds(margin - shift, T)])
        xs = pieces[0] if len(pieces) == 1 else jnp.concatenate(pieces, axis=0)
        w = w_ref[...]
        if k_min:                                       # drop dead-tap weight columns
            w = w[:, k_min * cinp:]
        acc = jnp.dot(w.astype(mm_dtype), xs.astype(mm_dtype),
                      preferred_element_type=jnp.float32)
        return acc + b_ref[...]                         # bias (coutp, 1) bcast over T

    h = x_ref[0].astype(jnp.float32)                    # (cin_pad, T), channel-major

    i = 0
    for dilation, has_down in zip(block_dilations, block_has_down):
        w1, b1, w2, b2 = w_refs[i:i + 4]
        i += 4
        if has_down:
            wd, bd = w_refs[i:i + 2]
            i += 2
        # conv1 -> chomp1 -> LeakyReLU -> dropout (identity at inference)
        out = _leaky_relu(causal_dilated_conv(h, w1, b1, dilation))
        # conv2 -> chomp2 -> LeakyReLU -> dropout (identity at inference)
        out = _leaky_relu(causal_dilated_conv(out, w2, b2, dilation))
        if has_down:
            res = jnp.dot(wd[...].astype(mm_dtype), h.astype(mm_dtype),
                          preferred_element_type=jnp.float32) + bd[...]
        else:
            res = h
        h = _leaky_relu(out + res)

    # head: linear1 -> linear2 -> linear3 -> softmax over features (sublane axis).
    # Written directly in the module's (size_out, T) output layout (no transpose).
    l1w, l1b, l2w, l2b, l3w, l3b = w_refs[i:i + 6]
    z = jnp.dot(l1w[...].astype(mm_dtype), h.astype(mm_dtype),
                preferred_element_type=jnp.float32) + l1b[...]
    z = jnp.dot(l2w[...].astype(mm_dtype), z.astype(mm_dtype),
                preferred_element_type=jnp.float32) + l2b[...]
    z = jnp.dot(l3w[...].astype(mm_dtype), z.astype(mm_dtype),
                preferred_element_type=jnp.float32) + l3b[...]
    z = z - jnp.max(z, axis=0, keepdims=True)
    e = jnp.exp(z)
    o_ref[0] = (e / jnp.sum(e, axis=0, keepdims=True)).astype(o_ref.dtype)


# ---------------------------------------------------------------------------
# One-time parameter preparation (hoisted out of the forward pass)
# ---------------------------------------------------------------------------
def prepare_params(params, size_in, size_out, kernel_size):
    """Layout prep done ONCE:
      * conv weights (O, I, K) -> flat (Op, K*Ip); column block k holds tap k,
        channel counts zero-padded to multiples of 8 so in-kernel stacking is
        sublane-aligned,
      * downsample conv (O, I, 1) -> (Op, Ip), biases -> zero-padded (Cp, 1),
      * nn.Linear weights stay in native (out, in) layout (kernel is channel-major);
        only linear1's columns are padded to the padded feature count.
    Returns (flat_weight_list, static_cfg)."""

    def pad_to(a, rows, cols):
        out = jnp.zeros((rows, cols), a.dtype)
        return out.at[: a.shape[0], : a.shape[1]].set(a)

    def flat_conv(w):  # torch layout (O, I, K)
        o, i, k = w.shape
        op, ip = _round_up(o, 8), _round_up(i, 8)
        f = jnp.zeros((op, k, ip), w.dtype)
        f = f.at[:o, :, :i].set(jnp.transpose(w, (0, 2, 1)))
        return f.reshape(op, k * ip)

    flat, dilations, has_down = [], [], []
    chans = [size_in]
    for blk in params["blocks"]:
        o_ch = blk["w1"].shape[0]
        op = _round_up(o_ch, 8)
        flat += [flat_conv(blk["w1"]), pad_to(blk["b1"].reshape(-1, 1), op, 1),
                 flat_conv(blk["w2"]), pad_to(blk["b2"].reshape(-1, 1), op, 1)]
        hd = blk["wd"] is not None
        if hd:
            ip = _round_up(blk["wd"].shape[1], 8)
            flat += [pad_to(blk["wd"][:, :, 0], op, ip),
                     pad_to(blk["bd"].reshape(-1, 1), op, 1)]
        dilations.append(int(blk["dilation"]))
        has_down.append(hd)
        chans.append(o_ch)

    cp_last = _round_up(chans[-1], 8)
    flat += [pad_to(params["lin1_w"], params["lin1_w"].shape[0], cp_last),
             params["lin1_b"].reshape(-1, 1),
             params["lin2_w"], params["lin2_b"].reshape(-1, 1),
             params["lin3_w"], params["lin3_b"].reshape(-1, 1)]

    cfg = dict(
        dilations=tuple(dilations),
        has_down=tuple(has_down),
        kernel_size=int(kernel_size),
        cin_pad=_round_up(size_in, 8),
        c_maxp=max(_round_up(c, 8) for c in chans),
        size_out=int(size_out),
    )
    return flat, cfg


# ---------------------------------------------------------------------------
# Forward wrapper (single fused pallas_call)
# ---------------------------------------------------------------------------
def tcn_slid_forward(x, flat_weights, cfg, *, mm_dtype=jnp.float32):
    """x: (B, T, size_in) — exactly the tensor the PyTorch module's forward receives.
    Returns (B, size_out, T) probabilities (module's output layout, written directly
    by the kernel; no output transpose).
    mm_dtype=jnp.bfloat16 gives 2x MXU throughput on v6e/v7x at non-toy sizes
    (elementwise/softmax math stays f32); default f32 for exact parity."""
    # TODO(synk): stride != 1 (strided conv, shorter output length) not supported.
    B, T, c_in = x.shape
    K = cfg["kernel_size"]
    margin = max(0, min((K - 1) * max(cfg["dilations"]), T - 1))

    # Channel-major input, channels zero-padded to a multiple of 8 (this mirrors the
    # x.transpose(1, 2) the PyTorch module itself performs; input-side only, tiny).
    x_cm = jnp.transpose(x, (0, 2, 1))
    if cfg["cin_pad"] != c_in:
        x_cm = jnp.pad(x_cm, ((0, 0), (0, cfg["cin_pad"] - c_in), (0, 0)))
    cin_p = x_cm.shape[1]

    in_specs = [pl.BlockSpec((1, cin_p, T), lambda b: (b, 0, 0))]
    # Weights: full-array blocks with constant index maps -> resident, DMA'd once.
    in_specs += [pl.BlockSpec(w.shape, lambda b: (0, 0)) for w in flat_weights]

    kernel = functools.partial(
        _tcn_slid_fused_kernel,
        kernel_size=K,
        block_dilations=cfg["dilations"],
        block_has_down=cfg["has_down"],
        seq_len=T,
        margin=margin,
        mm_dtype=mm_dtype,
    )
    return pl.pallas_call(
        kernel,
        out_shape=jax.ShapeDtypeStruct((B, cfg["size_out"], T), x.dtype),
        grid=(B,),  # one batch element per step; >= 2 parallel steps feeds both v7x TCs
        in_specs=in_specs,
        out_specs=pl.BlockSpec((1, cfg["size_out"], T), lambda b: (b, 0, 0)),
        scratch_shapes=[pltpu.VMEM((cfg["c_maxp"], margin + T), jnp.float32)],
        compiler_params=pltpu.CompilerParams(
            dimension_semantics=("parallel",),
            # NOTE: at real (non-toy) T / channel sizes, also set vmem_limit_bytes and
            # re-derive tiling so resident weights + double-buffered activation tiles
            # fit v7x's 64 MiB VMEM (128 MiB on v5e/v6e).
        ),
    )(x_cm, *flat_weights)


# ---------------------------------------------------------------------------
# Parameter init (deterministic, mirrors module __init__ shapes; PyTorch layout)
# ---------------------------------------------------------------------------
def init_params(key, size_in, size_out, list_conv_depths, size_kernel):
    def weight_norm_eff(v):
        # weight_norm: w = g * v / ||v||, g initialized to ||v|| (per out-channel),
        # so the effective weight at init equals v; eps guards a zero-norm channel.
        nrm = jnp.sqrt(jnp.sum(v ** 2, axis=(1, 2), keepdims=True))
        g = nrm
        return g * v / jnp.maximum(nrm, 1e-12)

    params = {"blocks": []}
    in_ch = size_in
    for i, out_ch in enumerate(list_conv_depths):
        key, k1, k2, k3, k4, k5, k6 = jax.random.split(key, 7)
        v1 = 0.01 * jax.random.normal(k1, (out_ch, in_ch, size_kernel), jnp.float32)
        v2 = 0.01 * jax.random.normal(k3, (out_ch, out_ch, size_kernel), jnp.float32)
        blk = dict(
            w1=weight_norm_eff(v1),
            b1=0.05 * jax.random.normal(k2, (out_ch,), jnp.float32),
            w2=weight_norm_eff(v2),
            b2=0.05 * jax.random.normal(k4, (out_ch,), jnp.float32),
            wd=None,
            bd=None,
            dilation=2 ** i,
        )
        if in_ch != out_ch:  # downsample = nn.Conv1d(in, out, 1)
            blk["wd"] = 0.01 * jax.random.normal(k5, (out_ch, in_ch, 1), jnp.float32)
            blk["bd"] = 0.05 * jax.random.normal(k6, (out_ch,), jnp.float32)
        params["blocks"].append(blk)
        in_ch = out_ch

    c = list_conv_depths[-1]
    h1, h2 = c // 2, c // 4
    key, k1, k2, k3, k4, k5, k6 = jax.random.split(key, 7)
    params["lin1_w"] = 0.1 * jax.random.normal(k1, (h1, c), jnp.float32)
    params["lin1_b"] = 0.05 * jax.random.normal(k2, (h1,), jnp.float32)
    params["lin2_w"] = 0.1 * jax.random.normal(k3, (h2, h1), jnp.float32)
    params["lin2_b"] = 0.05 * jax.random.normal(k4, (h2,), jnp.float32)
    params["lin3_w"] = 0.1 * jax.random.normal(k5, (size_out, h2), jnp.float32)
    params["lin3_b"] = 0.05 * jax.random.normal(k6, (size_out,), jnp.float32)
    return params


# ---------------------------------------------------------------------------
# Pure-JAX reference (mirrors the PyTorch module exactly)
# ---------------------------------------------------------------------------
def ref_forward(x, params, *, size_kernel):
    h = jnp.transpose(x, (0, 2, 1))  # (B, C, T) like PyTorch
    for blk in params["blocks"]:
        d = blk["dilation"]
        P = (size_kernel - 1) * d

        def conv(inp, w, b, P=P, d=d):
            y = jax.lax.conv_general_dilated(
                inp, w, window_strides=(1,), padding=[(P, P)],
                rhs_dilation=(d,), dimension_numbers=("NCH", "OIH", "NCH"),
            )
            if P > 0:
                y = y[:, :, :-P]  # Chomp1d
            return y + b[None, :, None]

        o = _leaky_relu(conv(h, blk["w1"], blk["b1"]))
        o = _leaky_relu(conv(o, blk["w2"], blk["b2"]))
        if blk["wd"] is None:
            res = h
        else:
            res = jnp.einsum("oc,bct->bot", blk["wd"][:, :, 0], h) + blk["bd"][None, :, None]
        h = _leaky_relu(o + res)

    z = jnp.transpose(h, (0, 2, 1))
    z = z @ params["lin1_w"].T + params["lin1_b"]
    z = z @ params["lin2_w"].T + params["lin2_b"]
    z = z @ params["lin3_w"].T + params["lin3_b"]
    p = jax.nn.softmax(z, axis=2)
    return jnp.transpose(p, (0, 2, 1))


if __name__ == "__main__":
    B, T = 2, 16
    size_in, size_out = 6, 5
    list_conv_depths = [8, 16]
    size_kernel, stride, dropout = 3, 1, 0.0  # dropout is identity at inference

    key = jax.random.PRNGKey(0)
    kx, kp = jax.random.split(key)
    x = jax.random.normal(kx, (B, T, size_in), jnp.float32)
    params = init_params(kp, size_in, size_out, list_conv_depths, size_kernel)

    # One-time weight layout prep (hoisted out of the forward).
    flat_weights, cfg = prepare_params(params, size_in, size_out, size_kernel)

    fwd = jax.jit(functools.partial(tcn_slid_forward, cfg=cfg))
    out = jax.block_until_ready(fwd(x, flat_weights))
    assert out.shape == (B, size_out, T)

    ref = ref_forward(x, params, size_kernel=size_kernel)
    np.testing.assert_allclose(np.asarray(out), np.asarray(ref), rtol=1e-4, atol=1e-5)
    print("KERNEL_OK")
</pallas_src>

<mosaic_0001>
module attributes {stable_mosaic.version = 11 : i64} {
  func.func @_tcn_slid_fused_kernel(%arg0: i32, %arg1: memref<1x8x16xf32, #tpu.memory_space<vmem>>, %arg2: memref<8x24xf32, #tpu.memory_space<vmem>>, %arg3: memref<8x1xf32, #tpu.memory_space<vmem>>, %arg4: memref<8x24xf32, #tpu.memory_space<vmem>>, %arg5: memref<8x1xf32, #tpu.memory_space<vmem>>, %arg6: memref<8x8xf32, #tpu.memory_space<vmem>>, %arg7: memref<8x1xf32, #tpu.memory_space<vmem>>, %arg8: memref<16x24xf32, #tpu.memory_space<vmem>>, %arg9: memref<16x1xf32, #tpu.memory_space<vmem>>, %arg10: memref<16x48xf32, #tpu.memory_space<vmem>>, %arg11: memref<16x1xf32, #tpu.memory_space<vmem>>, %arg12: memref<16x8xf32, #tpu.memory_space<vmem>>, %arg13: memref<16x1xf32, #tpu.memory_space<vmem>>, %arg14: memref<8x16xf32, #tpu.memory_space<vmem>>, %arg15: memref<8x1xf32, #tpu.memory_space<vmem>>, %arg16: memref<4x8xf32, #tpu.memory_space<vmem>>, %arg17: memref<4x1xf32, #tpu.memory_space<vmem>>, %arg18: memref<5x4xf32, #tpu.memory_space<vmem>>, %arg19: memref<5x1xf32, #tpu.memory_space<vmem>>, %arg20: memref<1x5x16xf32, #tpu.memory_space<vmem>>, %arg21: memref<16x20xf32, #tpu.memory_space<vmem>>) attributes {dimension_semantics = [#tpu.dimension_semantics<parallel>], iteration_bounds = array<i64: 2>, scalar_prefetch = 0 : i64, scratch_operands = 1 : i64, tpu.core_type = #tpu.core_type<tc>, window_params = [{transform_indices = @transform_0, window_bounds = array<i64: 1, 8, 16>}, {pipeline_mode = #tpu.pipeline_mode<synchronous>, transform_indices = @transform_1, window_bounds = array<i64: 8, 24>}, {pipeline_mode = #tpu.pipeline_mode<synchronous>, transform_indices = @transform_2, window_bounds = array<i64: 8, 1>}, {pipeline_mode = #tpu.pipeline_mode<synchronous>, transform_indices = @transform_3, window_bounds = array<i64: 8, 24>}, {pipeline_mode = #tpu.pipeline_mode<synchronous>, transform_indices = @transform_4, window_bounds = array<i64: 8, 1>}, {pipeline_mode = #tpu.pipeline_mode<synchronous>, transform_indices = @transform_5, window_bounds = array<i64: 8, 8>}, {pipeline_mode = #tpu.pipeline_mode<synchronous>, transform_indices = @transform_6, window_bounds = array<i64: 8, 1>}, {pipeline_mode = #tpu.pipeline_mode<synchronous>, transform_indices = @transform_7, window_bounds = array<i64: 16, 24>}, {pipeline_mode = #tpu.pipeline_mode<synchronous>, transform_indices = @transform_8, window_bounds = array<i64: 16, 1>}, {pipeline_mode = #tpu.pipeline_mode<synchronous>, transform_indices = @transform_9, window_bounds = array<i64: 16, 48>}, {pipeline_mode = #tpu.pipeline_mode<synchronous>, transform_indices = @transform_10, window_bounds = array<i64: 16, 1>}, {pipeline_mode = #tpu.pipeline_mode<synchronous>, transform_indices = @transform_11, window_bounds = array<i64: 16, 8>}, {pipeline_mode = #tpu.pipeline_mode<synchronous>, transform_indices = @transform_12, window_bounds = array<i64: 16, 1>}, {pipeline_mode = #tpu.pipeline_mode<synchronous>, transform_indices = @transform_13, window_bounds = array<i64: 8, 16>}, {pipeline_mode = #tpu.pipeline_mode<synchronous>, transform_indices = @transform_14, window_bounds = array<i64: 8, 1>}, {pipeline_mode = #tpu.pipeline_mode<synchronous>, transform_indices = @transform_15, window_bounds = array<i64: 4, 8>}, {pipeline_mode = #tpu.pipeline_mode<synchronous>, transform_indices = @transform_16, window_bounds = array<i64: 4, 1>}, {pipeline_mode = #tpu.pipeline_mode<synchronous>, transform_indices = @transform_17, window_bounds = array<i64: 5, 4>}, {pipeline_mode = #tpu.pipeline_mode<synchronous>, transform_indices = @transform_18, window_bounds = array<i64: 5, 1>}, {transform_indices = @transform_19, window_bounds = array<i64: 1, 5, 16>}]} {
    %cst = arith.constant 0.000000e+00 : f32
    %0 = vector.broadcast %cst : f32 to vector<16x20xf32>
    %c0 = arith.constant 0 : index
    %c0_0 = arith.constant 0 : index
    %1 = vector.load %arg21[%c0, %c0_0] : memref<16x20xf32, #tpu.memory_space<vmem>>, vector<16x20xf32>
    tpu.vector_store %arg21[%c0, %c0_0], %0 {strides = array<i32>} : memref<16x20xf32, #tpu.memory_space<vmem>>, vector<16x20xf32>,
    %c0_1 = arith.constant 0 : index
    %c0_2 = arith.constant 0 : index
    %c0_3 = arith.constant 0 : index
    %2 = vector.load %arg1[%c0_1, %c0_2, %c0_3] : memref<1x8x16xf32, #tpu.memory_space<vmem>>, vector<1x8x16xf32>
    %3 = vector.shape_cast %2 : vector<1x8x16xf32> to vector<8x16xf32>
    %c0_4 = arith.constant 0 : index
    %c4 = arith.constant 4 : index
    %4 = vector.load %arg21[%c0_4, %c4] : memref<16x20xf32, #tpu.memory_space<vmem>>, vector<8x16xf32>
    tpu.vector_store %arg21[%c0_4, %c4], %3 {strides = array<i32>} : memref<16x20xf32, #tpu.memory_space<vmem>>, vector<8x16xf32>,
    %c0_5 = arith.constant 0 : index
    %c2 = arith.constant 2 : index
    %5 = vector.load %arg21[%c0_5, %c2] : memref<16x20xf32, #tpu.memory_space<vmem>>, vector<8x16xf32>
    %c0_6 = arith.constant 0 : index
    %c3 = arith.constant 3 : index
    %6 = vector.load %arg21[%c0_6, %c3] : memref<16x20xf32, #tpu.memory_space<vmem>>, vector<8x16xf32>
    %c0_7 = arith.constant 0 : index
    %c4_8 = arith.constant 4 : index
    %7 = vector.load %arg21[%c0_7, %c4_8] : memref<16x20xf32, #tpu.memory_space<vmem>>, vector<8x16xf32>
    %8 = tpu.concatenate %5, %6, %7 in 0 : vector<8x16xf32>, vector<8x16xf32>, vector<8x16xf32> -> vector<24x16xf32>
    %c0_9 = arith.constant 0 : index
    %c0_10 = arith.constant 0 : index
    %9 = vector.load %arg2[%c0_9, %c0_10] : memref<8x24xf32, #tpu.memory_space<vmem>>, vector<8x24xf32>
    %cst_11 = arith.constant dense<0.000000e+00> : vector<8x16xf32>
    %10 = tpu.matmul %9, %8, %cst_11 {dimension_numbers = #tpu.dot_dimension_numbers<[1], [0], [0], [1], [0, 0, 1, 1], [], []>} : vector<8x24xf32>, vector<24x16xf32>, vector<8x16xf32> -> vector<8x16xf32>
    %c0_12 = arith.constant 0 : index
    %c0_13 = arith.constant 0 : index
    %11 = vector.load %arg3[%c0_12, %c0_13] : memref<8x1xf32, #tpu.memory_space<vmem>>, vector<8x1xf32>
    %12 = vector.broadcast %11 : vector<8x1xf32> to vector<8x16xf32>
    %13 = arith.addf %10, %12 : vector<8x16xf32>
    %cst_14 = arith.constant 0.000000e+00 : f32
    %14 = vector.broadcast %cst_14 : f32 to vector<8x16xf32>
    %15 = arith.cmpf ogt, %13, %14 : vector<8x16xf32>
    %cst_15 = arith.constant 0.00999999977 : f32
    %16 = vector.broadcast %cst_15 : f32 to vector<8x16xf32>
    %17 = arith.mulf %16, %13 : vector<8x16xf32>
    %18 = arith.select %15, %13, %17 : vector<8x16xi1>, vector<8x16xf32>
    %c0_16 = arith.constant 0 : index
    %c4_17 = arith.constant 4 : index
    %19 = vector.load %arg21[%c0_16, %c4_17] : memref<16x20xf32, #tpu.memory_space<vmem>>, vector<8x16xf32>
    tpu.vector_store %arg21[%c0_16, %c4_17], %18 {strides = array<i32>} : memref<16x20xf32, #tpu.memory_space<vmem>>, vector<8x16xf32>,
    %c0_18 = arith.constant 0 : index
    %c2_19 = arith.constant 2 : index
    %20 = vector.load %arg21[%c0_18, %c2_19] : memref<16x20xf32, #tpu.memory_space<vmem>>, vector<8x16xf32>
    %c0_20 = arith.constant 0 : index
    %c3_21 = arith.constant 3 : index
    %21 = vector.load %arg21[%c0_20, %c3_21] : memref<16x20xf32, #tpu.memory_space<vmem>>, vector<8x16xf32>
    %c0_22 = arith.constant 0 : index
    %c4_23 = arith.constant 4 : index
    %22 = vector.load %arg21[%c0_22, %c4_23] : memref<16x20xf32, #tpu.memory_space<vmem>>, vector<8x16xf32>
    %23 = tpu.concatenate %20, %21, %22 in 0 : vector<8x16xf32>, vector<8x16xf32>, vector<8x16xf32> -> vector<24x16xf32>
    %c0_24 = arith.constant 0 : index
    %c0_25 = arith.constant 0 : index
    %24 = vector.load %arg4[%c0_24, %c0_25] : memref<8x24xf32, #tpu.memory_space<vmem>>, vector<8x24xf32>
    %cst_26 = arith.constant dense<0.000000e+00> : vector<8x16xf32>
    %25 = tpu.matmul %24, %23, %cst_26 {dimension_numbers = #tpu.dot_dimension_numbers<[1], [0], [0], [1], [0, 0, 1, 1], [], []>} : vector<8x24xf32>, vector<24x16xf32>, vector<8x16xf32> -> vector<8x16xf32>
    %c0_27 = arith.constant 0 : index
    %c0_28 = arith.constant 0 : index
    %26 = vector.load %arg5[%c0_27, %c0_28] : memref<8x1xf32, #tpu.memory_space<vmem>>, vector<8x1xf32>
    %27 = vector.broadcast %26 : vector<8x1xf32> to vector<8x16xf32>
    %28 = arith.addf %25, %27 : vector<8x16xf32>
    %cst_29 = arith.constant 0.000000e+00 : f32
    %29 = vector.broadcast %cst_29 : f32 to vector<8x16xf32>
    %30 = arith.cmpf ogt, %28, %29 : vector<8x16xf32>
    %cst_30 = arith.constant 0.00999999977 : f32
    %31 = vector.broadcast %cst_30 : f32 to vector<8x16xf32>
    %32 = arith.mulf %31, %28 : vector<8x16xf32>
    %33 = arith.select %30, %28, %32 : vector<8x16xi1>, vector<8x16xf32>
    %c0_31 = arith.constant 0 : index
    %c0_32 = arith.constant 0 : index
    %34 = vector.load %arg6[%c0_31, %c0_32] : memref<8x8xf32, #tpu.memory_space<vmem>>, vector<8x8xf32>
    %cst_33 = arith.constant dense<0.000000e+00> : vector<8x16xf32>
    %35 = tpu.matmul %34, %3, %cst_33 {dimension_numbers = #tpu.dot_dimension_numbers<[1], [0], [0], [1], [0, 0, 1, 1], [], []>} : vector<8x8xf32>, vector<8x16xf32>, vector<8x16xf32> -> vector<8x16xf32>
    %c0_34 = arith.constant 0 : index
    %c0_35 = arith.constant 0 : index
    %36 = vector.load %arg7[%c0_34, %c0_35] : memref<8x1xf32, #tpu.memory_space<vmem>>, vector<8x1xf32>
    %37 = vector.broadcast %36 : vector<8x1xf32> to vector<8x16xf32>
    %38 = arith.addf %35, %37 : vector<8x16xf32>
    %39 = arith.addf %33, %38 : vector<8x16xf32>
    %cst_36 = arith.constant 0.000000e+00 : f32
    %40 = vector.broadcast %cst_36 : f32 to vector<8x16xf32>
    %41 = arith.cmpf ogt, %39, %40 : vector<8x16xf32>
    %cst_37 = arith.constant 0.00999999977 : f32
    %42 = vector.broadcast %cst_37 : f32 to vector<8x16xf32>
    %43 = arith.mulf %42, %39 : vector<8x16xf32>
    %44 = arith.select %41, %39, %43 : vector<8x16xi1>, vector<8x16xf32>
    %c0_38 = arith.constant 0 : index
    %c4_39 = arith.constant 4 : index
    %45 = vector.load %arg21[%c0_38, %c4_39] : memref<16x20xf32, #tpu.memory_space<vmem>>, vector<8x16xf32>
    tpu.vector_store %arg21[%c0_38, %c4_39], %44 {strides = array<i32>} : memref<16x20xf32, #tpu.memory_space<vmem>>, vector<8x16xf32>,
    %c0_40 = arith.constant 0 : index
    %c0_41 = arith.constant 0 : index
    %46 = vector.load %arg21[%c0_40, %c0_41] : memref<16x20xf32, #tpu.memory_space<vmem>>, vector<8x16xf32>
    %c0_42 = arith.constant 0 : index
    %c2_43 = arith.constant 2 : index
    %47 = vector.load %arg21[%c0_42, %c2_43] : memref<16x20xf32, #tpu.memory_space<vmem>>, vector<8x16xf32>
    %c0_44 = arith.constant 0 : index
    %c4_45 = arith.constant 4 : index
    %48 = vector.load %arg21[%c0_44, %c4_45] : memref<16x20xf32, #tpu.memory_space<vmem>>, vector<8x16xf32>
    %49 = tpu.concatenate %46, %47, %48 in 0 : vector<8x16xf32>, vector<8x16xf32>, vector<8x16xf32> -> vector<24x16xf32>
    %c0_46 = arith.constant 0 : index
    %c0_47 = arith.constant 0 : index
    %50 = vector.load %arg8[%c0_46, %c0_47] : memref<16x24xf32, #tpu.memory_space<vmem>>, vector<16x24xf32>
    %cst_48 = arith.constant dense<0.000000e+00> : vector<16x16xf32>
    %51 = tpu.matmul %50, %49, %cst_48 {dimension_numbers = #tpu.dot_dimension_numbers<[1], [0], [0], [1], [0, 0, 1, 1], [], []>} : vector<16x24xf32>, vector<24x16xf32>, vector<16x16xf32> -> vector<16x16xf32>
    %c0_49 = arith.constant 0 : index
    %c0_50 = arith.constant 0 : index
    %52 = vector.load %arg9[%c0_49, %c0_50] : memref<16x1xf32, #tpu.memory_space<vmem>>, vector<16x1xf32>
    %53 = vector.broadcast %52 : vector<16x1xf32> to vector<16x16xf32>
    %54 = arith.addf %51, %53 : vector<16x16xf32>
    %cst_51 = arith.constant 0.000000e+00 : f32
    %55 = vector.broadcast %cst_51 : f32 to vector<16x16xf32>
    %56 = arith.cmpf ogt, %54, %55 : vector<16x16xf32>
    %cst_52 = arith.constant 0.00999999977 : f32
    %57 = vector.broadcast %cst_52 : f32 to vector<16x16xf32>
    %58 = arith.mulf %57, %54 : vector<16x16xf32>
    %59 = arith.select %56, %54, %58 : vector<16x16xi1>, vector<16x16xf32>
    %c0_53 = arith.constant 0 : index
    %c4_54 = arith.constant 4 : index
    %60 = vector.load %arg21[%c0_53, %c4_54] : memref<16x20xf32, #tpu.memory_space<vmem>>, vector<16x16xf32>
    tpu.vector_store %arg21[%c0_53, %c4_54], %59 {strides = array<i32>} : memref<16x20xf32, #tpu.memory_space<vmem>>, vector<16x16xf32>,
    %c0_55 = arith.constant 0 : index
    %c0_56 = arith.constant 0 : index
    %61 = vector.load %arg21[%c0_55, %c0_56] : memref<16x20xf32, #tpu.memory_space<vmem>>, vector<16x16xf32>
    %c0_57 = arith.constant 0 : index
    %c2_58 = arith.constant 2 : index
    %62 = vector.load %arg21[%c0_57, %c2_58] : memref<16x20xf32, #tpu.memory_space<vmem>>, vector<16x16xf32>
    %c0_59 = arith.constant 0 : index
    %c4_60 = arith.constant 4 : index
    %63 = vector.load %arg21[%c0_59, %c4_60] : memref<16x20xf32, #tpu.memory_space<vmem>>, vector<16x16xf32>
    %64 = tpu.concatenate %61, %62, %63 in 0 : vector<16x16xf32>, vector<16x16xf32>, vector<16x16xf32> -> vector<48x16xf32>
    %c0_61 = arith.constant 0 : index
    %c0_62 = arith.constant 0 : index
    %65 = vector.load %arg10[%c0_61, %c0_62] : memref<16x48xf32, #tpu.memory_space<vmem>>, vector<16x48xf32>
    %cst_63 = arith.constant dense<0.000000e+00> : vector<16x16xf32>
    %66 = tpu.matmul %65, %64, %cst_63 {dimension_numbers = #tpu.dot_dimension_numbers<[1], [0], [0], [1], [0, 0, 1, 1], [], []>} : vector<16x48xf32>, vector<48x16xf32>, vector<16x16xf32> -> vector<16x16xf32>
    %c0_64 = arith.constant 0 : index
    %c0_65 = arith.constant 0 : index
    %67 = vector.load %arg11[%c0_64, %c0_65] : memref<16x1xf32, #tpu.memory_space<vmem>>, vector<16x1xf32>
    %68 = vector.broadcast %67 : vector<16x1xf32> to vector<16x16xf32>
    %69 = arith.addf %66, %68 : vector<16x16xf32>
    %cst_66 = arith.constant 0.000000e+00 : f32
    %70 = vector.broadcast %cst_66 : f32 to vector<16x16xf32>
    %71 = arith.cmpf ogt, %69, %70 : vector<16x16xf32>
    %cst_67 = arith.constant 0.00999999977 : f32
    %72 = vector.broadcast %cst_67 : f32 to vector<16x16xf32>
    %73 = arith.mulf %72, %69 : vector<16x16xf32>
    %74 = arith.select %71, %69, %73 : vector<16x16xi1>, vector<16x16xf32>
    %c0_68 = arith.constant 0 : index
    %c0_69 = arith.constant 0 : index
    %75 = vector.load %arg12[%c0_68, %c0_69] : memref<16x8xf32, #tpu.memory_space<vmem>>, vector<16x8xf32>
    %cst_70 = arith.constant dense<0.000000e+00> : vector<16x16xf32>
    %76 = tpu.matmul %75, %44, %cst_70 {dimension_numbers = #tpu.dot_dimension_numbers<[1], [0], [0], [1], [0, 0, 1, 1], [], []>} : vector<16x8xf32>, vector<8x16xf32>, vector<16x16xf32> -> vector<16x16xf32>
    %c0_71 = arith.constant 0 : index
    %c0_72 = arith.constant 0 : index
    %77 = vector.load %arg13[%c0_71, %c0_72] : memref<16x1xf32, #tpu.memory_space<vmem>>, vector<16x1xf32>
    %78 = vector.broadcast %77 : vector<16x1xf32> to vector<16x16xf32>
    %79 = arith.addf %76, %78 : vector<16x16xf32>
    %80 = arith.addf %74, %79 : vector<16x16xf32>
    %cst_73 = arith.constant 0.000000e+00 : f32
    %81 = vector.broadcast %cst_73 : f32 to vector<16x16xf32>
    %82 = arith.cmpf ogt, %80, %81 : vector<16x16xf32>
    %cst_74 = arith.constant 0.00999999977 : f32
    %83 = vector.broadcast %cst_74 : f32 to vector<16x16xf32>
    %84 = arith.mulf %83, %80 : vector<16x16xf32>
    %85 = arith.select %82, %80, %84 : vector<16x16xi1>, vector<16x16xf32>
    %c0_75 = arith.constant 0 : index
    %c0_76 = arith.constant 0 : index
    %86 = vector.load %arg14[%c0_75, %c0_76] : memref<8x16xf32, #tpu.memory_space<vmem>>, vector<8x16xf32>
    %cst_77 = arith.constant dense<0.000000e+00> : vector<8x16xf32>
    %87 = tpu.matmul %86, %85, %cst_77 {dimension_numbers = #tpu.dot_dimension_numbers<[1], [0], [0], [1], [0, 0, 1, 1], [], []>} : vector<8x16xf32>, vector<16x16xf32>, vector<8x16xf32> -> vector<8x16xf32>
    %c0_78 = arith.constant 0 : index
    %c0_79 = arith.constant 0 : index
    %88 = vector.load %arg15[%c0_78, %c0_79] : memref<8x1xf32, #tpu.memory_space<vmem>>, vector<8x1xf32>
    %89 = vector.broadcast %88 : vector<8x1xf32> to vector<8x16xf32>
    %90 = arith.addf %87, %89 : vector<8x16xf32>
    %c0_80 = arith.constant 0 : index
    %c0_81 = arith.constant 0 : index
    %91 = vector.load %arg16[%c0_80, %c0_81] : memref<4x8xf32, #tpu.memory_space<vmem>>, vector<4x8xf32>
    %cst_82 = arith.constant dense<0.000000e+00> : vector<4x16xf32>
    %92 = tpu.matmul %91, %90, %cst_82 {dimension_numbers = #tpu.dot_dimension_numbers<[1], [0], [0], [1], [0, 0, 1, 1], [], []>} : vector<4x8xf32>, vector<8x16xf32>, vector<4x16xf32> -> vector<4x16xf32>
    %c0_83 = arith.constant 0 : index
    %c0_84 = arith.constant 0 : index
    %93 = vector.load %arg17[%c0_83, %c0_84] : memref<4x1xf32, #tpu.memory_space<vmem>>, vector<4x1xf32>
    %94 = vector.broadcast %93 : vector<4x1xf32> to vector<4x16xf32>
    %95 = arith.addf %92, %94 : vector<4x16xf32>
    %c0_85 = arith.constant 0 : index
    %c0_86 = arith.constant 0 : index
    %96 = vector.load %arg18[%c0_85, %c0_86] : memref<5x4xf32, #tpu.memory_space<vmem>>, vector<5x4xf32>
    %cst_87 = arith.constant dense<0.000000e+00> : vector<5x16xf32>
    %97 = tpu.matmul %96, %95, %cst_87 {dimension_numbers = #tpu.dot_dimension_numbers<[1], [0], [0], [1], [0, 0, 1, 1], [], []>} : vector<5x4xf32>, vector<4x16xf32>, vector<5x16xf32> -> vector<5x16xf32>
    %c0_88 = arith.constant 0 : index
    %c0_89 = arith.constant 0 : index
    %98 = vector.load %arg19[%c0_88, %c0_89] : memref<5x1xf32, #tpu.memory_space<vmem>>, vector<5x1xf32>
    %99 = vector.broadcast %98 : vector<5x1xf32> to vector<5x16xf32>
    %100 = arith.addf %97, %99 : vector<5x16xf32>
    %cst_90 = arith.constant dense<0xFF800000> : vector<16xf32>
    %101 = vector.multi_reduction <maximumf>, %100, %cst_90 [0] : vector<5x16xf32> to vector<16xf32>
    %102 = vector.shape_cast %101 : vector<16xf32> to vector<1x16xf32>
    %103 = vector.broadcast %102 : vector<1x16xf32> to vector<5x16xf32>
    %104 = arith.subf %100, %103 : vector<5x16xf32>
    %105 = math.exp %104 : vector<5x16xf32>
    %cst_91 = arith.constant dense<0.000000e+00> : vector<16xf32>
    %106 = vector.multi_reduction <add>, %105, %cst_91 [0] : vector<5x16xf32> to vector<16xf32>
    %107 = vector.shape_cast %106 : vector<16xf32> to vector<1x16xf32>
    %108 = vector.broadcast %107 : vector<1x16xf32> to vector<5x16xf32>
    %109 = arith.divf %105, %108 : vector<5x16xf32>
    %c0_92 = arith.constant 0 : index
    %c0_93 = arith.constant 0 : index
    %c0_94 = arith.constant 0 : index
    %110 = vector.load %arg20[%c0_92, %c0_93, %c0_94] : memref<1x5x16xf32, #tpu.memory_space<vmem>>, vector<1x5x16xf32>
    %111 = vector.shape_cast %110 : vector<1x5x16xf32> to vector<5x16xf32>
    %112 = vector.shape_cast %109 : vector<5x16xf32> to vector<1x5x16xf32>
    tpu.vector_store %arg20[%c0_92, %c0_93, %c0_94], %112 {strides = array<i32>} : memref<1x5x16xf32, #tpu.memory_space<vmem>>, vector<1x5x16xf32>,
    return
  }
  func.func @transform_0(%arg0: i32) -> (i32, i32, i32) {
    %c0_i32 = arith.constant 0 : i32
    %c0_i32_0 = arith.constant 0 : i32
    %c0_i32_1 = arith.constant 0 : i32
    return %arg0, %c0_i32, %c0_i32_0 : i32, i32, i32
  }
  func.func @transform_1(%arg0: i32) -> (i32, i32) {
    %c0_i32 = arith.constant 0 : i32
    %c0_i32_0 = arith.constant 0 : i32
    %c0_i32_1 = arith.constant 0 : i32
    return %c0_i32, %c0_i32_0 : i32, i32
  }
  func.func @transform_2(%arg0: i32) -> (i32, i32) {
    %c0_i32 = arith.constant 0 : i32
    %c0_i32_0 = arith.constant 0 : i32
    %c0_i32_1 = arith.constant 0 : i32
    return %c0_i32, %c0_i32_0 : i32, i32
  }
  func.func @transform_3(%arg0: i32) -> (i32, i32) {
    %c0_i32 = arith.constant 0 : i32
    %c0_i32_0 = arith.constant 0 : i32
    %c0_i32_1 = arith.constant 0 : i32
    return %c0_i32, %c0_i32_0 : i32, i32
  }
  func.func @transform_4(%arg0: i32) -> (i32, i32) {
    %c0_i32 = arith.constant 0 : i32
    %c0_i32_0 = arith.constant 0 : i32
    %c0_i32_1 = arith.constant 0 : i32
    return %c0_i32, %c0_i32_0 : i32, i32
  }
  func.func @transform_5(%arg0: i32) -> (i32, i32) {
    %c0_i32 = arith.constant 0 : i32
    %c0_i32_0 = arith.constant 0 : i32
    %c0_i32_1 = arith.constant 0 : i32
    return %c0_i32, %c0_i32_0 : i32, i32
  }
  func.func @transform_6(%arg0: i32) -> (i32, i32) {
    %c0_i32 = arith.constant 0 : i32
    %c0_i32_0 = arith.constant 0 : i32
    %c0_i32_1 = arith.constant 0 : i32
    return %c0_i32, %c0_i32_0 : i32, i32
  }
  func.func @transform_7(%arg0: i32) -> (i32, i32) {
    %c0_i32 = arith.constant 0 : i32
    %c0_i32_0 = arith.constant 0 : i32
    %c0_i32_1 = arith.constant 0 : i32
    return %c0_i32, %c0_i32_0 : i32, i32
  }
  func.func @transform_8(%arg0: i32) -> (i32, i32) {
    %c0_i32 = arith.constant 0 : i32
    %c0_i32_0 = arith.constant 0 : i32
    %c0_i32_1 = arith.constant 0 : i32
    return %c0_i32, %c0_i32_0 : i32, i32
  }
  func.func @transform_9(%arg0: i32) -> (i32, i32) {
    %c0_i32 = arith.constant 0 : i32
    %c0_i32_0 = arith.constant 0 : i32
    %c0_i32_1 = arith.constant 0 : i32
    return %c0_i32, %c0_i32_0 : i32, i32
  }
  func.func @transform_10(%arg0: i32) -> (i32, i32) {
    %c0_i32 = arith.constant 0 : i32
    %c0_i32_0 = arith.constant 0 : i32
    %c0_i32_1 = arith.constant 0 : i32
    return %c0_i32, %c0_i32_0 : i32, i32
  }
  func.func @transform_11(%arg0: i32) -> (i32, i32) {
    %c0_i32 = arith.constant 0 : i32
    %c0_i32_0 = arith.constant 0 : i32
    %c0_i32_1 = arith.constant 0 : i32
    return %c0_i32, %c0_i32_0 : i32, i32
  }
  func.func @transform_12(%arg0: i32) -> (i32, i32) {
    %c0_i32 = arith.constant 0 : i32
    %c0_i32_0 = arith.constant 0 : i32
    %c0_i32_1 = arith.constant 0 : i32
    return %c0_i32, %c0_i32_0 : i32, i32
  }
  func.func @transform_13(%arg0: i32) -> (i32, i32) {
    %c0_i32 = arith.constant 0 : i32
    %c0_i32_0 = arith.constant 0 : i32
    %c0_i32_1 = arith.constant 0 : i32
    return %c0_i32, %c0_i32_0 : i32, i32
  }
  func.func @transform_14(%arg0: i32) -> (i32, i32) {
    %c0_i32 = arith.constant 0 : i32
    %c0_i32_0 = arith.constant 0 : i32
    %c0_i32_1 = arith.constant 0 : i32
    return %c0_i32, %c0_i32_0 : i32, i32
  }
  func.func @transform_15(%arg0: i32) -> (i32, i32) {
    %c0_i32 = arith.constant 0 : i32
    %c0_i32_0 = arith.constant 0 : i32
    %c0_i32_1 = arith.constant 0 : i32
    return %c0_i32, %c0_i32_0 : i32, i32
  }
  func.func @transform_16(%arg0: i32) -> (i32, i32) {
    %c0_i32 = arith.constant 0 : i32
    %c0_i32_0 = arith.constant 0 : i32
    %c0_i32_1 = arith.constant 0 : i32
    return %c0_i32, %c0_i32_0 : i32, i32
  }
  func.func @transform_17(%arg0: i32) -> (i32, i32) {
    %c0_i32 = arith.constant 0 : i32
    %c0_i32_0 = arith.constant 0 : i32
    %c0_i32_1 = arith.constant 0 : i32
    return %c0_i32, %c0_i32_0 : i32, i32
  }
  func.func @transform_18(%arg0: i32) -> (i32, i32) {
    %c0_i32 = arith.constant 0 : i32
    %c0_i32_0 = arith.constant 0 : i32
    %c0_i32_1 = arith.constant 0 : i32
    return %c0_i32, %c0_i32_0 : i32, i32
  }
  func.func @transform_19(%arg0: i32) -> (i32, i32, i32) {
    %c0_i32 = arith.constant 0 : i32
    %c0_i32_0 = arith.constant 0 : i32
    %c0_i32_1 = arith.constant 0 : i32
    return %arg0, %c0_i32, %c0_i32_0 : i32, i32, i32
  }
}

</mosaic_0001>

<bundles_post_ra>
// kernel: tcn_slid_forward.1
= control target key start
LH: loop header
LB: loop body
LE: loop exit
PB: predicated region body
PF: predicated region fallthrough
CT: control target
= control target key end

     0   :  { %s2006_s0 = inlined_call_operand.vmem [shape: f32[2,8,16], index: 0, kind: input, shape index: {}]   ;;  %s2007_s1 = inlined_call_operand.vmem [shape: f32[8,24], index: 1, kind: input, shape index: {}]   ;;  %s2008_s2 = inlined_call_operand.vmem [shape: f32[8,1], index: 2, kind: input, shape index: {}]   ;;  %s2009_s3 = inlined_call_operand.vmem [shape: f32[8,24], index: 3, kind: input, shape index: {}]   ;;  %s2010_s4 = inlined_call_operand.vmem [shape: f32[8,1], index: 4, kind: input, shape index: {}]   ;;  %s2011_s5 = inlined_call_operand.vmem [shape: f32[8,8], index: 5, kind: input, shape index: {}]   ;;  %s2012_s6 = inlined_call_operand.vmem [shape: f32[8,1], index: 6, kind: input, shape index: {}]   ;;  %s2013_s7 = inlined_call_operand.vmem [shape: f32[16,24], index: 7, kind: input, shape index: {}]   ;;  %s2014_s8 = inlined_call_operand.vmem [shape: f32[16,1], index: 8, kind: input, shape index: {}]   ;;  %s2015_s9 = inlined_call_operand.vmem [shape: f32[16,48], index: 9, kind: input, shape index: {}]   ;;  %s2016_s10 = inlined_call_operand.vmem [shape: f32[16,1], index: 10, kind: input, shape index: {}]   ;;  %s2017_s11 = inlined_call_operand.vmem [shape: f32[16,8], index: 11, kind: input, shape index: {}]   ;;  %s2018_s12 = inlined_call_operand.vmem [shape: f32[16,1], index: 12, kind: input, shape index: {}]   ;;  %s2019_s13 = inlined_call_operand.vmem [shape: f32[8,16], index: 13, kind: input, shape index: {}]   ;;  %s2020_s14 = inlined_call_operand.vmem [shape: f32[8,1], index: 14, kind: input, shape index: {}]   ;;  %s2021_s15 = inlined_call_operand.vmem [shape: f32[4,8], index: 15, kind: input, shape index: {}]   ;;  %s2022_s16 = inlined_call_operand.vmem [shape: f32[4,1], index: 16, kind: input, shape index: {}]   ;;  %s2023_s17 = inlined_call_operand.vmem [shape: f32[5,4], index: 17, kind: input, shape index: {}]   ;;  %s2024_s18 = inlined_call_operand.vmem [shape: f32[5,1], index: 18, kind: input, shape index: {}]   ;;  %s2025_s19 = inlined_call_operand.vmem [shape: f32[2,5,16], index: 19, kind: output, shape index: {}]  }
   0x1   :  { %2026 = sst [smem:[#allocation3_spill]] %s2006_s0  ;;  %s1853_s0 = smov 0  }
   0x2   :  { %2027 = sst [smem:[#allocation4_spill]] %s2007_s1 }
   0x3   :  { %2028 = sst [smem:[#allocation5_spill]] %s2008_s2 }
   0x4   :  { %2029 = sst [smem:[#allocation6_spill]] %s2009_s3 }
   0x5 LB: > { %s1556_s30 = sadd.s32 4294967295, %s1743_s0   ;;  %p1560_p0 = scmp.ge.s32.totalorder %s1743_s0, 1  ;;  %s1743_s0 = sphi %s1853_s0, %s29_s0  }
   0x6   : > { %p536_p1 = scmp.lt.s32.totalorder %s1743_s0, 3 }
   0x8   : > { %p537_p2 = pnand %p1560_p0, %p536_p1 }
   0x9   : > { %p590_p3 = scmp.lt.s32.totalorder (!%p537_p2), %s1556_s30, 1  ;;  %vm598_vm0 = vcmask (!%p537_p2), 162816   ;;  %v1745_v0 = vmov (!%p537_p2), 0.0   ;;  %s2030_s22 = sld [smem:[#allocation3_spill]] (!%p537_p2)  ;;  %vm606_vm1 = vcmask (!%p537_p2), 162848   ;;  %v1749_v4 = vmov (!%p537_p2), 0.0|0.0  }
   0xa   : > { %540 = sbr.rel (%p537_p2) target bundleno = 2823 (0xb07), region = 96  ;;  %599 = vst.msk [vmem:[#allocation2] sm:$0xff] (!%p537_p2), %vm598_vm0, %v1745_v0  ;;  %600 = vst.msk [vmem:[#allocation2 + $0x8] sm:$0xff] (!%p537_p2), %vm598_vm0, %v1745_v0  ;;  %s1746_s23 = smov (!%p537_p2), 4   ;;  %1680 = vmatprep.subr.bf16.mxu0 (!%p537_p2), %v1749_v4  ;;  %1683 = vmatprep.subr.bf16.mxu1 (!%p537_p2), %v1749_v4  ;;  %vm1750_vm2 = vmmov (!%p537_p2), 0   ;;  %v1751_v5 = vmov (!%p537_p2), 0  }
   0xb   : > { %s1747_s24 = smov (!%p537_p2), 126   ;;  %s1748_s25 = smov (!%p537_p2), 127   ;;  %1617 = vmatprep.mubr.msk.f32.mxu0 (!%p537_p2), %vm1750_vm2, %v1745_v0  ;;  %1626 = vmatprep.mubr.msk.f32.mxu1 (!%p537_p2), %vm1750_vm2, %v1745_v0  ;;  %vm628_vm3 = vcmask (!%p537_p2), 195584   ;;  %v806_v21 = vld [vmem:[%s2011_s5] sm:$0xff] (!%p537_p2)  ;;  %vm813_vm5 = vcmask (!%p537_p2), 64512   ;;  %v907_v46 = vld [vmem:[%s2014_s8 + $0x8] sm:$0xff] (!%p537_p2) }
   0xc   : > { %1721 = vset.pattern.permute.xlu1 (!%p537_p2), %v1751_v5  ;;  %1722 = vset.pattern.permute.xlu0 (!%p537_p2), %v1751_v5  ;;  %s2031_s27 = sld [smem:[#allocation5_spill]] (!%p537_p2)  ;;  %s2032_s21 = sld [smem:[#allocation4_spill]] (!%p537_p2)  ;;  %v717_v24 = vld [vmem:[%s2010_s4] sm:$0xff] (!%p537_p2)  ;;  %v905_v51 = vld [vmem:[%s2013_s7 + $0x8] sm:$0xff] (!%p537_p2)  ;;  %vm1045_vm10 = vcmask (!%p537_p2), 392192   ;;  %vm1243_vm15 = vcmask (!%p537_p2), 130048  }
   0xd   : > { %v807_v25 = vld [vmem:[%s2012_s6] sm:$0xff] (!%p537_p2)  ;;  %s2033_s29 = sld [smem:[#allocation6_spill]] (!%p537_p2)  ;;  %v1134_v53 = vld [vmem:[%s2017_s11 + $0x8] sm:$0xff] (!%p537_p2)  ;;  %vm1408_vm0 = vcmask (!%p537_p2), 1043456  }
   0xe   : > { %v904_v44 = vld [vmem:[%s2013_s7] sm:$0xff] (!%p537_p2) }
   0xf   : > { %v906_v47 = vld [vmem:[%s2014_s8] sm:$0xff] (!%p537_p2) }
  0x10   : > { %v1133_v52 = vld [vmem:[%s2017_s11] sm:$0xff] (!%p537_p2) }
  0x11   : > { %s2035_s30 = smov (!%p590_p3, %s1556_s30), 1 }
  0x12   : > { %s1561_s20 = sshll.u32 %s2035_s30, 3  ;;  %v615_v8 = vld [vmem:[%s2031_s27] sm:$0xff] }
  0x13   : > { %s593_s2 = scalar_lea.vmem %s2030_s22, %s1561_s20  ;;  %v614_v11 = vld [vmem:[%s2032_s21] sm:$0xff]  ;;  %s1752_s22 = smov 124  }
  0x14   : > { %v601_v1 = vld [vmem:[%s593_s2] sm:$0xff] }
  0x15   : > { %603 = vrot.lane.b32.xlu0 %v601_v1, %s1746_s23  ;;  %v716_v28 = vld [vmem:[%s2033_s29] sm:$0xff] }
  0x87   : > { %v604_v2 = vpop.permute.xlu0 %603 }
  0x88   : > { %607 = vst.msk [vmem:[#allocation2] sm:$0xff] %vm606_vm1, %v604_v2 }
  0x8f   : > { %v608_v3 = vld [vmem:[#allocation2] sm:$0xff] }
  0x90   : > { %612 = vrot.lane.b32.xlu1 %v608_v3, %s1747_s24  ;;  %610 = vrot.lane.b32.xlu0 %v608_v3, %s1748_s25 }
 0x102   : > { %v613_v6 = vpop.permute.xlu1 %612  ;;  %v611_v7 = vpop.permute.xlu0 %610 }
 0x103   : > { %623 = vrot.lane.b32.xlu0 %v613_v6, %s1747_s24  ;;  %621 = vrot.lane.b32.xlu1 %v611_v7, %s1747_s24 }
 0x107   : > { %618 = vperm.xlu1 %1721, %v615_v8   ;;  %v1034_v8 = vld [vmem:[%s2016_s10 + $0x8] sm:$0xff] }
 0x175   : > { %v622_v9 = vpop.permute.xlu1 %621  ;;  %v624_v12 = vpop.permute.xlu0 %623 }
 0x176   : > { %v1681_v10 = vpack.c.bf16 %v622_v9, %v613_v6  ;;  %v1033_v9 = vld [vmem:[%s2016_s10] sm:$0xff] }
 0x178   : > { %1682 = vmatpush3.bf16.msra.mxu0 %v1681_v10 }
 0x179   : > { %1615 = vmatprep.subr.mxu0 %v1745_v0 }
 0x17c   : > { %1616 = vmatpush3.msra.mxu0 %v624_v12  ;;  %v1136_v12 = vld [vmem:[%s2018_s12 + $0x8] sm:$0xff] }
 0x17d   : > { %1618 = vmatmul.mubr.msk.f32.vlgmr.msra.gmra.mrb[0].mxu0 %vm628_vm3, %v614_v11  ;;  %1629 = vmatprep.subr.mxu0 %v1745_v0 }
 0x17e   : > { %1630 = vmatpush3.msra.mxu0 %v601_v1  ;;  %1631 = vmatprep.mubr.msk.f32.mxu0 %vm1750_vm2, %v1745_v0 }
 0x181   : > { %1632 = vmatmul.mubr.msk.f32.vlgmr.msra.gmra.mrb[2].mxu0 %vm813_vm5, %v806_v21 }
 0x186   : > { %v619_v13 = vpop.permute.xlu1 %618 }
 0x250   : > { %v698_v14 = vpop.f32.mrb[0].mxu0 }
 0x251   : > { %v699_v15 = vadd.f32 %v698_v14, %v619_v13  ;;  %v1619_v16 = vpop.f32.mrb[1].mxu0  ;;  %v1135_v13 = vld [vmem:[%s2018_s12] sm:$0xff] }
 0x252   : > { %v1318_v14 = vld [vmem:[%s2022_s16] sm:$0xf] }
 0x253   : > { %v703_v17 = vmul.f32 0.01, %v699_v15  ;;  %vm702_vm4 = vcmp.gt.f32.partialorder %v699_v15, 0.0  ;;  %v1398_v16 = vld [vmem:[%s2024_s18] sm:$0x1f] }
 0x254   : > { %v883_v30 = vpop.f32.mrb[2].mxu0 }
 0x255   : > { %v704_v18 = vsel %vm702_vm4, %v699_v15, %v703_v17  ;;  %v1633_v31 = vpop.f32.mrb[3].mxu0  ;;  %v1237_v15 = vld [vmem:[%s2020_s14] sm:$0xff] }
 0x256   : > { %706 = vrot.lane.b32.xlu0 %v704_v18, %s1746_s23 }
 0x2c8   : > { %v707_v19 = vpop.permute.xlu0 %706 }
 0x2c9   : > { %709 = vst.msk [vmem:[#allocation2] sm:$0xff] %vm606_vm1, %v707_v19 }
 0x2d0   : > { %v710_v20 = vld [vmem:[#allocation2] sm:$0xff] }
 0x2d1   : > { %714 = vrot.lane.b32.xlu0 %v710_v20, %s1747_s24  ;;  %712 = vrot.lane.b32.xlu1 %v710_v20, %s1748_s25 }
 0x343   : > { %v715_v22 = vpop.permute.xlu0 %714  ;;  %v713_v23 = vpop.permute.xlu1 %712 }
 0x344   : > { %725 = vrot.lane.b32.xlu0 %v715_v22, %s1747_s24  ;;  %723 = vrot.lane.b32.xlu1 %v713_v23, %s1747_s24 }
 0x348   : > { %720 = vperm.xlu1 %1721, %v717_v24   ;;  %810 = vperm.xlu0 %1722, %v807_v25   ;;  %v1032_v25 = vld [vmem:[%s2015_s9 + $0x8] sm:$0xff] }
 0x3b6   : > { %v724_v26 = vpop.permute.xlu1 %723  ;;  %v726_v29 = vpop.permute.xlu0 %725 }
 0x3b7   : > { %v1684_v27 = vpack.c.bf16 %v724_v26, %v715_v22 }
 0x3b9   : > { %1685 = vmatpush3.bf16.msra.mxu1 %v1684_v27 }
 0x3ba   : > { %1624 = vmatprep.subr.mxu1 %v1745_v0 }
 0x3bd   : > { %1625 = vmatpush3.msra.mxu1 %v726_v29 }
 0x3be   : > { %1627 = vmatmul.mubr.msk.f32.vlgmr.msra.gmra.mrb[0].mxu1 %vm628_vm3, %v716_v28 }
 0x3bf   : > { %1640 = vmatprep.mubr.msk.f32.mxu1 %vm628_vm3, %v904_v44 }
 0x3c7   : > { %v811_v32 = vpop.permute.xlu0 %810  ;;  %v721_v33 = vpop.permute.xlu1 %720 }
 0x3c8   : > { %v884_v37 = vadd.f32 %v883_v30, %v811_v32 }
 0x491   : > { %v799_v34 = vpop.f32.mrb[0].mxu1 }
 0x492   : > { %v800_v35 = vadd.f32 %v799_v34, %v721_v33  ;;  %v1628_v36 = vpop.f32.mrb[1].mxu1 }
 0x494   : > { %vm803_vm6 = vcmp.gt.f32.partialorder %v800_v35, 0.0  ;;  %v804_v38 = vmul.f32 0.01, %v800_v35 }
 0x496   : > { %v805_v39 = vsel %vm803_vm6, %v800_v35, %v804_v38 }
 0x497   : > { %v887_v40 = vadd.f32 %v884_v37, %v805_v39 }
 0x499   : > { %vm888_vm7 = vcmp.gt.f32.partialorder %v887_v40, 0.0  ;;  %v889_v41 = vmul.f32 0.01, %v887_v40 }
 0x49b   : > { %v890_v42 = vsel %vm888_vm7, %v887_v40, %v889_v41 }
 0x49c   : > { %892 = vrot.lane.b32.xlu1 %v890_v42, %s1746_s23 }
 0x50e   : > { %v893_v43 = vpop.permute.xlu1 %892 }
 0x50f   : > { %895 = vst.msk [vmem:[#allocation2] sm:$0xff] %vm606_vm1, %v893_v43 }
 0x516   : > { %v896_v45 = vld [vmem:[#allocation2] sm:$0xff] }
 0x517   : > { %901 = vrot.lane.b32.xlu0 %v896_v45, %s1752_s22  ;;  %898 = vrot.lane.b32.xlu1 %v896_v45, %s1747_s24 }
 0x51b   : > { %915 = vperm.xlu0 %1722, %v907_v46   ;;  %910 = vperm.xlu1 %1721, %v906_v47   ;;  %v1236_v47 = vld [vmem:[%s2019_s13] sm:$0xff] }
 0x589   : > { %v899_v48 = vpop.permute.xlu1 %898  ;;  %v902_v50 = vpop.permute.xlu0 %901 }
 0x58a   : > { %v1686_v49 = vpack.c.bf16 %v899_v48, %v896_v45 }
 0x58c   : > { %1687 = vmatprep.subr.bf16.mxu1 %v1686_v49 }
 0x58d   : > { %1689 = vmatpush3.bf16.msra.mxu1 %v1686_v49 }
 0x58e   : > { %1638 = vmatprep.subr.mxu1 %v902_v50 }
 0x591   : > { %1639 = vmatpush3.msra.mxu1 %v902_v50 }
 0x592   : > { %1641 = vmatmul.mubr.msk.f32.vlgmr.msra.gmra.mrb[2].mxu1 %vm628_vm3, %v905_v51  ;;  %1658 = vmatprep.subr.mxu1 %v890_v42 }
 0x593   : > { %1659 = vmatpush3.msra.mxu1 %v890_v42  ;;  %1660 = vmatprep.mubr.msk.f32.mxu1 %vm813_vm5, %v1133_v52  ;;  %v1317_v52 = vld [vmem:[%s2021_s15] sm:$0xf] }
 0x594   : > { %1702 = vmatprep.subr.bf16.mxu1 %v1749_v4  ;;  %v1031_v4 = vld [vmem:[%s2015_s9] sm:$0xff] }
 0x595   : > { %1655 = vmatprep.mubr.msk.f32.mxu0 %vm1045_vm10, %v1031_v4 }
 0x596   : > { %1661 = vmatmul.mubr.msk.f32.vlgmr.msra.gmra.mrb[4].mxu1 %vm813_vm5, %v1134_v53 }
 0x597   : > { %1667 = vmatprep.mubr.msk.f32.mxu1 %vm1750_vm2, %v1745_v0 }
 0x59a   : > { %v916_v54 = vpop.permute.xlu0 %915  ;;  %v911_v56 = vpop.permute.xlu1 %910 }
 0x665   : > { %v1642_v55 = vpop.f32.mrb[2].mxu1 }
 0x666   : > { %v996_v57 = vadd.f32 %v1642_v55, %v916_v54  ;;  %v990_v58 = vpop.f32.mrb[3].mxu1 }
 0x667   : > { %v991_v59 = vadd.f32 %v990_v58, %v911_v56 }
 0x668   : > { %v1002_v60 = vmul.f32 0.01, %v996_v57  ;;  %vm1000_vm8 = vcmp.gt.f32.partialorder %v996_v57, 0.0 }
 0x669   : > { %v1001_v61 = vmul.f32 0.01, %v991_v59  ;;  %vm999_vm9 = vcmp.gt.f32.partialorder %v991_v59, 0.0  ;;  %v1662_v10 = vpop.f32.mrb[4].mxu1 }
 0x66a   : > { %v1004_v62 = vsel %vm1000_vm8, %v996_v57, %v1002_v60  ;;  %v1219_v11 = vpop.f32.mrb[5].mxu1 }
 0x66b   : > { %1009 = vrot.lane.b32.xlu0 %v1004_v62, %s1746_s23  ;;  %v1003_v63 = vsel %vm999_vm9, %v991_v59, %v1001_v61 }
 0x66c   : > { %1007 = vrot.lane.b32.xlu1 %v1003_v63, %s1746_s23  ;;  %s597_s23 = scalar_lea.vmem %s2025_s19, %s1561_s20 }
 0x6dd   : > { %v1010_v1 = vpop.permute.xlu0 %1009 }
 0x6de   : > { %1014 = vst.msk [vmem:[#allocation2 + $0x8] sm:$0xff] %vm606_vm1, %v1010_v1  ;;  %v1008_v2 = vpop.permute.xlu1 %1007 }
 0x6df   : > { %1013 = vst.msk [vmem:[#allocation2] sm:$0xff] %vm606_vm1, %v1008_v2  ;;  %vm1404_vm1 = vcmask 31744  }
 0x6e5   : > { %v1016_v3 = vld [vmem:[#allocation2 + $0x8] sm:$0xff] }
 0x6e6   : > { %v1015_v5 = vld [vmem:[#allocation2] sm:$0xff] }
 0x6e7   : > { %v1728_v6 = vpack.i.bf16 %v1016_v3, %v1015_v5  ;;  %v1690_v7 = vpack.c.bf16 %v1016_v3, %v1015_v5 }
 0x6e9   : > { %1729 = vrot.lane.b32.xlu0 %v1728_v6, %s1752_s22  ;;  %1724 = vrot.lane.b32.xlu1 %v1728_v6, %s1747_s24 }
 0x6ea   : > { %1691 = vmatprep.subr.bf16.mxu0 %v1690_v7 }
 0x6eb   : > { %1693 = vmatpush3.bf16.msra.mxu0 %v1690_v7 }
 0x6ed   : > { %1042 = vperm.xlu0 %1722, %v1034_v8   ;;  %1037 = vperm.xlu1 %1721, %v1033_v9  }
 0x6f1   : > { %1144 = vperm.xlu0 %1722, %v1136_v12   ;;  %1139 = vperm.xlu1 %1721, %v1135_v13  }
 0x6f5   : > { %1321 = vperm.xlu0 %1722, %v1318_v14   ;;  %1240 = vperm.xlu1 %1721, %v1237_v15  }
 0x6f9   : > { %1401 = vperm.xlu1 %1721, %v1398_v16  }
 0x75b   : > { %v1730_v17 = vpop.permute.xlu0 %1729  ;;  %v1725_v18 = vpop.permute.xlu1 %1724 }
 0x75c   : > { %v1732_v19 = vunpack.i.h.bf16 %v1730_v17  ;;  %v1731_v20 = vunpack.i.l.bf16 %v1730_v17  ;;  %v1727_v21 = vunpack.i.h.bf16 %v1725_v18  ;;  %v1726_v22 = vunpack.i.l.bf16 %v1725_v18 }
 0x75e   : > { %v1694_v23 = vpack.c.bf16 %v1727_v21, %v1726_v22  ;;  %v1698_v24 = vpack.c.bf16 %v1732_v19, %v1731_v20 }
 0x760   : > { %1695 = vmatprep.subr.bf16.mxu0 %v1694_v23 }
 0x761   : > { %1697 = vmatpush3.bf16.msra.mxu0 %v1694_v23 }
 0x762   : > { %1699 = vmatprep.subr.bf16.mxu0 %v1698_v24 }
 0x765   : > { %1701 = vmatpush3.bf16.msra.mxu0 %v1698_v24 }
 0x766   : > { %1675 = vmatprep.subr.mxu0 %v1745_v0 }
 0x768   : > { %1656 = vmatmul.mubr.msk.f32.vlgmr.msra.gmra.mrb[4].mxu0 %vm1045_vm10, %v1032_v25 }
 0x769   : > { %1677 = vmatprep.mubr.msk.f32.mxu0 %vm1750_vm2, %v1745_v0 }
 0x76c   : > { %v1043_v26 = vpop.permute.xlu0 %1042  ;;  %v1038_v27 = vpop.permute.xlu1 %1037 }
 0x770   : > { %v1145_v29 = vpop.permute.xlu0 %1144  ;;  %v1140_v32 = vpop.permute.xlu1 %1139 }
 0x771   : > { %v1225_v35 = vadd.f32 %v1662_v10, %v1145_v29  ;;  %v1220_v37 = vadd.f32 %v1219_v11, %v1140_v32 }
 0x774   : > { %v1241_v48 = vpop.permute.xlu1 %1240  ;;  %v1322_v53 = vpop.permute.xlu0 %1321 }
 0x778   : > { %v1402_v57 = vpop.permute.xlu1 %1401 }
 0x83b   : > { %v1657_v28 = vpop.f32.mrb[4].mxu0 }
 0x83c   : > { %v1124_v30 = vadd.f32 %v1657_v28, %v1043_v26  ;;  %v1118_v31 = vpop.f32.mrb[5].mxu0 }
 0x83d   : > { %v1119_v33 = vadd.f32 %v1118_v31, %v1038_v27 }
 0x83e   : > { %vm1128_vm11 = vcmp.gt.f32.partialorder %v1124_v30, 0.0  ;;  %v1130_v34 = vmul.f32 0.01, %v1124_v30 }
 0x83f   : > { %vm1127_vm12 = vcmp.gt.f32.partialorder %v1119_v33, 0.0  ;;  %v1129_v36 = vmul.f32 0.01, %v1119_v33 }
 0x840   : > { %v1132_v38 = vsel %vm1128_vm11, %v1124_v30, %v1130_v34 }
 0x841   : > { %v1229_v39 = vadd.f32 %v1225_v35, %v1132_v38  ;;  %v1131_v40 = vsel %vm1127_vm12, %v1119_v33, %v1129_v36 }
 0x842   : > { %v1228_v41 = vadd.f32 %v1220_v37, %v1131_v40 }
 0x843   : > { %vm1231_vm13 = vcmp.gt.f32.partialorder %v1229_v39, 0.0  ;;  %v1233_v42 = vmul.f32 0.01, %v1229_v39 }
 0x844   : > { %vm1230_vm14 = vcmp.gt.f32.partialorder %v1228_v41, 0.0  ;;  %v1232_v43 = vmul.f32 0.01, %v1228_v41 }
 0x845   : > { %v1235_v44 = vsel %vm1231_vm13, %v1229_v39, %v1233_v42 }
 0x846   : > { %v1234_v45 = vsel %vm1230_vm14, %v1228_v41, %v1232_v43 }
 0x847   : > { %v1703_v46 = vpack.c.bf16 %v1235_v44, %v1234_v45 }
 0x849   : > { %1704 = vmatpush3.bf16.msra.mxu1 %v1703_v46 }
 0x84a   : > { %1670 = vmatprep.subr.mxu1 %v1745_v0 }
 0x84c   : > { %1668 = vmatmul.mubr.msk.f32.vlgmr.msra.gmra.mrb[6].mxu1 %vm1243_vm15, %v1236_v47 }
 0x84d   : > { %1672 = vmatprep.mubr.msk.f32.mxu1 %vm1750_vm2, %v1745_v0  ;;  %v1397_v0 = vld [vmem:[%s2023_s17] sm:$0x1f]  ;;  %vm1482_vm2 = vcmask 126976  }
 0x91f   : > { %v1313_v49 = vpop.f32.mrb[6].mxu1 }
 0x920   : > { %v1314_v50 = vadd.f32 %v1313_v49, %v1241_v48  ;;  %v1669_v51 = vpop.f32.mrb[7].mxu1 }
 0x922   : > { %1671 = vmatpush3.msra.mxu1 %v1314_v50 }
 0x923   : > { %1673 = vmatmul.mubr.msk.f32.vlgmr.msra.gmra.mrb[8].mxu1 %vm813_vm5, %v1317_v52 }
 0x9f6   : > { %v1393_v54 = vpop.f32.mrb[8].mxu1 }
 0x9f7   : > { %v1394_v55 = vadd.f32 %v1393_v54, %v1322_v53  ;;  %v1674_v56 = vpop.f32.mrb[9].mxu1 }
 0x9f9   : > { %1676 = vmatpush3.msk.msra.mxu0 %vm1408_vm0, %v1394_v55 }
 0x9fa   : > { %1678 = vmatmul.mubr.msk.f32.vlgmr.msra.gmra.mrb[6].mxu0 %vm1404_vm1, %v1397_v0 }
 0xacd   : > { %v1478_v58 = vpop.f32.mrb[6].mxu0 }
 0xace   : > { %v1479_v59 = vadd.f32 %v1478_v58, %v1402_v57  ;;  %v1679_v60 = vpop.f32.mrb[7].mxu0 }
 0xad0   : > { %v1483_v61 = vsel %vm1482_vm2, %v1479_v59, -inf }
 0xad1   : > { %v1484_v62 = vrot.slane %v1483_v61, 4 }
 0xad3   : > { %v1485_v63 = vmax.f32 %v1483_v61, %v1484_v62 }
 0xad5   : > { %v1486_v1 = vrot.slane %v1485_v63, 2 }
 0xad7   : > { %v1487_v2 = vmax.f32 %v1485_v63, %v1486_v1 }
 0xad9   : > { %v1488_v3 = vrot.slane %v1487_v2, 1 }
 0xadb   : > { %v1489_v4 = vmax.f32 %v1487_v2, %v1488_v3 }
 0xadd   : > { %v1490_v5 = vsub.f32 %v1479_v59, %v1489_v4 }
 0xadf   : > { %v1491_v6 = vmul.f32 1.442695, %v1490_v5 }
 0xae1   : > { %1733 = vpow2.f32 %v1491_v6 }
 0xaeb   : > { %v1734_v7 = vpop.eup %1733 }
 0xaec   : > { %v1493_v8 = vsel %vm1482_vm2, %v1734_v7, 0.0 }
 0xaed   : > { %v1494_v9 = vrot.slane %v1493_v8, 4 }
 0xaef   : > { %v1495_v10 = vadd.f32 %v1494_v9, %v1493_v8 }
 0xaf1   : > { %v1496_v11 = vrot.slane %v1495_v10, 2 }
 0xaf3   : > { %v1497_v12 = vadd.f32 %v1496_v11, %v1495_v10 }
 0xaf5   : > { %v1498_v13 = vrot.slane %v1497_v12, 1 }
 0xaf7   : > { %v1499_v14 = vadd.f32 %v1498_v13, %v1497_v12 }
 0xaf9   : > { %1735 = vrcp.f32 %v1499_v14 }
 0xb03   : > { %v1736_v15 = vpop.eup %1735 }
 0xb04   : > { %v1501_v16 = vmul.f32 %v1736_v15, %v1734_v7 }
 0xb06   : > { %1502 = vst.msk [vmem:[%s597_s23] sm:$0x1f] %vm1482_vm2, %v1501_v16 }
 0xb07 PF: > { %s29_s0 = sadd.s32 1, %s1743_s0  }
 0xb08   : > { %p26_p4 = scmp.ge.s32.totalorder %s29_s0, 4  }
 0xb0a   :  { %28 = sbr.rel (!%p26_p4) target bundleno = 5 (0x5), region = 126 }

</bundles_post_ra>
